<compile_context>
chip_gen: v5e
topology: v5e:2x2
jax: 0.10.0
libtpu: 0.0.40
codegen_flags: <defaults>
</compile_context>

<pallas_src>
import functools

import jax
import jax.numpy as jnp
from jax import lax
from jax.experimental import pallas as pl
from jax.experimental.pallas import tpu as pltpu

T_FRAMES = 8  # fixed: vision_inputs.repeat(1, 1, 8, 1, 1)


def _round_up(x, m):
    return (x + m - 1) // m * m


def _auto_tk(F, D_pad):
    """Pick the reduction tile so each W_fold DMA is ~2 MiB (HBM-bound GEMV)."""
    target_bytes = 2 * 1024 * 1024
    tk = max(512, target_bytes // (2 * D_pad))
    tk = min(int(_round_up(tk, 128)), 4096)
    # Keep the double-buffered W_fold tiles under ~16 MiB (v7x VMEM = 64 MiB).
    while tk > 512 and 2 * tk * D_pad * 2 > 16 * 1024 * 1024:
        tk = int(_round_up(tk // 2, 128))
    tk = min(tk, int(_round_up(F, 128)))
    return max(128, int(_round_up(tk, 128)))


def _vmem_limit(need_bytes):
    # Leave generous headroom but stay inside v7x's 64 MiB physical VMEM.
    return int(min(48 * 1024 * 1024, max(32 * 1024 * 1024, 2 * need_bytes)))


# ------------------------ one-time host preprocessing ---------------------- #
def prepare_languagebind_params(w_embed, semantic_modal, image_shape, *,
                                tk=None, num_f_splits=1):
    """One-time preprocessing; cache the returned dict across forward calls.

    w_embed        : (C*8*H*W, D) stand-in linear video encoder, rows in
                     (C, T, H, W) flatten order.
    semantic_modal : (N, D) precomputed semantic-modal embeddings.
    image_shape    : (C, H, W) of a single frame.
    tk             : reduction tile along the folded feature axis (multiple of
                     128); None -> auto-sized for ~2 MiB W_fold DMAs.
    num_f_splits   : split the folded-feature reduction into this many
                     independent partial sums on a *parallel* grid axis
                     (use 2 on v7x to shard the weight stream across both
                     TensorCores; 1 on single-TC v5e/v6e).
    """
    C, H, W = image_shape
    F_full = C * T_FRAMES * H * W
    D = w_embed.shape[1]
    N = semantic_modal.shape[0]
    assert w_embed.shape == (F_full, D), (w_embed.shape, (F_full, D))
    assert semantic_modal.shape == (N, D), (semantic_modal.shape, (N, D))
    assert num_f_splits >= 1

    # Fold the 8 bit-identical frames into the encoder weights:
    #   sum_t W[c,t,h,w,:] * x[c,h,w] == W_fold @ x_flat  (x_flat in CHW order)
    F = C * H * W
    w_fold = (w_embed.astype(jnp.float32)
              .reshape(C, T_FRAMES, H, W, D).sum(axis=1).reshape(F, D))

    D_pad = _round_up(D, 128)
    N_pad = _round_up(N, 128)
    if tk is None:
        tk = _auto_tk(F, D_pad)
    assert tk % 128 == 0, tk
    F_pad = _round_up(F, tk * num_f_splits)

    # bf16 weights: halves the dominant HBM stream; matmuls accumulate in f32.
    # TODO(synk): int8 (v5e/v6e) / fp8 (v7x) weight quantization would halve it
    #             again if the accuracy budget allows.
    w_p = jnp.zeros((F_pad, D_pad), jnp.bfloat16).at[:F, :D].set(
        w_fold.astype(jnp.bfloat16))
    # semantic_modal pre-transposed to (D, N), stored in bf16 (fast MXU path,
    # half the VMEM footprint).
    sem_t = jnp.zeros((D_pad, N_pad), jnp.bfloat16).at[:D, :N].set(
        semantic_modal.T.astype(jnp.bfloat16))

    return dict(w_p=w_p, sem_t=sem_t, image_shape=(C, H, W), D=D, N=N,
                D_pad=D_pad, N_pad=N_pad, F=F, F_pad=F_pad, tk=tk,
                num_f_splits=num_f_splits)


# ------------------------------ Pallas kernels ----------------------------- #
def _embed_partial_kernel(x_ref, w_ref, part_ref):
    """Partial embedding for one F-split: part[s] = x[:, chunk_s] @ W_fold[chunk_s].

    Grid: (num_f_splits, batch_tiles, nk_per); the last axis is the reduction,
    accumulated directly into the f32 output block (resident in VMEM across k).

    x_ref   : (tb, tk)     bf16  un-replicated pixel tile
    w_ref   : (tk, D_pad)  bf16  T-folded encoder weight tile
    part_ref: (tb, D_pad)  f32   partial embedding for this split
    """
    k = pl.program_id(2)

    @pl.when(k == 0)
    def _():
        part_ref[...] = jnp.zeros_like(part_ref)

    # bf16 x bf16 -> f32 accumulation on the MXU.
    part_ref[...] += jnp.dot(x_ref[...], w_ref[...],
                             preferred_element_type=jnp.float32)


def _score_kernel(part_ref, sem_ref, out_ref, *, n_valid, n_pad):
    """Combine F-split partials, logits matmul, masked softmax.

    part_ref: (S, tb, D_pad) f32   partial embeddings across F-splits
    sem_ref : (D_pad, N_pad) bf16  semantic_modal, pre-transposed
    out_ref : (tb, N_pad)    f32   softmax scores (padded)
    """
    emb = jnp.sum(part_ref[...], axis=0)                        # (tb, D_pad) f32
    # logits = embeddings @ semantic_modal.T (sem is pre-transposed, bf16 MXU).
    logits = jnp.dot(emb.astype(jnp.bfloat16), sem_ref[...],
                     preferred_element_type=jnp.float32)        # (tb, N_pad)
    if n_valid != n_pad:  # static: skip the mask when N is already lane-dense
        col = lax.broadcasted_iota(jnp.int32, logits.shape, 1)
        logits = jnp.where(col < n_valid, logits, -1e30)
    m = jnp.max(logits, axis=-1, keepdims=True)
    e = jnp.exp(logits - m)
    # Exact normalization: runs once per batch tile, off the hot path.
    out_ref[...] = (e / jnp.sum(e, axis=-1, keepdims=True)).astype(out_ref.dtype)


# --------------------------------- Forward --------------------------------- #
def languagebind_super_forward(vision_inputs, params):
    """scores = softmax(encoder(repeat(x, 8 frames)) @ semantic_modal.T)."""
    B, C, H, W = vision_inputs.shape
    assert (C, H, W) == tuple(params["image_shape"])
    F, F_pad, tk = params["F"], params["F_pad"], params["tk"]
    D_pad, N_pad, N = params["D_pad"], params["N_pad"], params["N"]
    S = params["num_f_splits"]
    w_p, sem_t = params["w_p"], params["sem_t"]

    B_pad = _round_up(max(B, 1), 16)  # bf16 sublane packing
    # (C, H, W) flatten order matches the T-folded weight rows.
    x = vision_inputs.reshape(B, F).astype(jnp.bfloat16)
    x_p = jnp.zeros((B_pad, F_pad), jnp.bfloat16).at[:B, :F].set(x)

    tb = B_pad
    nb = B_pad // tb
    nk_per = F_pad // (tk * S)

    # --- kernel 1: folded-encoder matmul, K-pipelined, F split across S -----
    embed_vmem = 2 * tb * tk * 2 + 2 * tk * D_pad * 2 + 2 * tb * D_pad * 4
    partial = pl.pallas_call(
        _embed_partial_kernel,
        out_shape=jax.ShapeDtypeStruct((S, B_pad, D_pad), jnp.float32),
        grid_spec=pltpu.PrefetchScalarGridSpec(
            num_scalar_prefetch=0,
            grid=(S, nb, nk_per),
            in_specs=[
                # pixels: (tb, tk) tile of this split's k-th chunk
                pl.BlockSpec((tb, tk), lambda s, i, k: (i, s * nk_per + k)),
                # W_fold: (tk, D_pad) tile of the same chunk
                pl.BlockSpec((tk, D_pad), lambda s, i, k: (s * nk_per + k, 0)),
            ],
            out_specs=pl.BlockSpec((None, tb, D_pad), lambda s, i, k: (s, i, 0)),
        ),
        compiler_params=pltpu.CompilerParams(
            dimension_semantics=("parallel", "parallel", "arbitrary"),
            vmem_limit_bytes=_vmem_limit(embed_vmem),
        ),
    )(x_p, w_p)

    # --- kernel 2: combine partials + logits + masked softmax ---------------
    score_vmem = (2 * S * tb * D_pad * 4 + 2 * D_pad * N_pad * 2
                  + 2 * tb * N_pad * 4)
    score_kernel = functools.partial(_score_kernel, n_valid=N, n_pad=N_pad)
    scores_p = pl.pallas_call(
        score_kernel,
        out_shape=jax.ShapeDtypeStruct((B_pad, N_pad), jnp.float32),
        grid_spec=pltpu.PrefetchScalarGridSpec(
            num_scalar_prefetch=0,
            grid=(nb,),
            in_specs=[
                pl.BlockSpec((S, tb, D_pad), lambda i: (0, i, 0)),
                pl.BlockSpec((D_pad, N_pad), lambda i: (0, 0)),
            ],
            out_specs=pl.BlockSpec((tb, N_pad), lambda i: (i, 0)),
        ),
        compiler_params=pltpu.CompilerParams(
            dimension_semantics=("parallel",),
            vmem_limit_bytes=_vmem_limit(score_vmem),
        ),
    )(partial, sem_t)

    return scores_p[:B, :N]


# ----------------------------------- Main ----------------------------------- #
if __name__ == "__main__":
    def reference_scores(vision_inputs, w_embed, semantic_modal):
        """Pure-JAX f32 reference of the exact forward (explicit 8x repeat)."""
        B, C, H, W = vision_inputs.shape
        F_full = C * T_FRAMES * H * W
        video = jnp.broadcast_to(vision_inputs[:, :, None, :, :],
                                 (B, C, T_FRAMES, H, W))
        flat = video.reshape(B, F_full)
        logits = (flat @ w_embed) @ semantic_modal.T
        return jax.nn.softmax(logits, axis=-1)

    def run_case(case_id, B, C, H, W, D, N, **prep_kwargs):
        F_full = C * T_FRAMES * H * W
        key = jax.random.fold_in(jax.random.PRNGKey(0), case_id)
        k_x, k_w, k_s = jax.random.split(key, 3)
        vision = jax.random.normal(k_x, (B, C, H, W), dtype=jnp.float32)
        w_embed = jax.random.normal(k_w, (F_full, D), dtype=jnp.float32)
        w_embed = w_embed / jnp.sqrt(jnp.float32(F_full))
        sem = jax.random.normal(k_s, (N, D), dtype=jnp.float32)
        sem = sem / jnp.linalg.norm(sem, axis=-1, keepdims=True)

        params = prepare_languagebind_params(w_embed, sem, (C, H, W),
                                             **prep_kwargs)
        scores = jax.block_until_ready(
            languagebind_super_forward(vision, params))
        ref = reference_scores(vision, w_embed, sem)

        assert scores.shape == (B, N), scores.shape
        assert bool(jnp.all(jnp.isfinite(scores)))
        row_sums = jnp.sum(scores, axis=-1)
        assert bool(jnp.all(jnp.abs(row_sums - 1.0) < 1e-3)), row_sums
        max_err = float(jnp.max(jnp.abs(scores - ref)))
        assert max_err < 3e-2, max_err  # bf16 matmul tolerance

    # Case 0: small default config -> single K step (single-shot matmul path).
    run_case(0, B=2, C=3, H=16, W=16, D=32, N=16)
    # Case 1: larger F with explicit small tile + 2-way F split: exercises the
    # K-pipelined accumulator and the cross-split combine (v7x 2-TC layout).
    run_case(1, B=2, C=3, H=32, W=32, D=32, N=16, tk=512, num_f_splits=2)

    print("KERNEL_OK")
</pallas_src>

<mosaic_0001>
module attributes {stable_mosaic.version = 11 : i64} {
  func.func @_embed_partial_kernel(%arg0: i32, %arg1: i32, %arg2: i32, %arg3: memref<16x768xbf16, #tpu.memory_space<vmem>>, %arg4: memref<768x128xbf16, #tpu.memory_space<vmem>>, %arg5: memref<1x16x128xf32, #tpu.memory_space<vmem>>) attributes {dimension_semantics = [#tpu.dimension_semantics<parallel>, #tpu.dimension_semantics<parallel>, #tpu.dimension_semantics<arbitrary>], iteration_bounds = array<i64: 1, 1, 1>, scalar_prefetch = 0 : i64, scratch_operands = 0 : i64, tpu.core_type = #tpu.core_type<tc>, window_params = [{transform_indices = @transform_0, window_bounds = array<i64: 16, 768>}, {transform_indices = @transform_1, window_bounds = array<i64: 768, 128>}, {transform_indices = @transform_2, window_bounds = array<i64: 1, 16, 128>}]} {
    %c0_i32 = arith.constant 0 : i32
    %0 = arith.cmpi eq, %arg2, %c0_i32 : i32
    %1 = arith.extui %0 : i1 to i32
    %c0_i32_0 = arith.constant 0 : i32
    %2 = arith.cmpi ne, %1, %c0_i32_0 : i32
    scf.if %2 {
      %cst_10 = arith.constant 0.000000e+00 : f32
      %12 = vector.broadcast %cst_10 : f32 to vector<16x128xf32>
      %c0_11 = arith.constant 0 : index
      %c0_12 = arith.constant 0 : index
      %c0_13 = arith.constant 0 : index
      %13 = vector.load %arg5[%c0_11, %c0_12, %c0_13] : memref<1x16x128xf32, #tpu.memory_space<vmem>>, vector<1x16x128xf32>
      %14 = vector.shape_cast %13 : vector<1x16x128xf32> to vector<16x128xf32>
      %15 = vector.shape_cast %12 : vector<16x128xf32> to vector<1x16x128xf32>
      tpu.vector_store %arg5[%c0_11, %c0_12, %c0_13], %15 {strides = array<i32>} : memref<1x16x128xf32, #tpu.memory_space<vmem>>, vector<1x16x128xf32>,
    } else {
    }
    %c0 = arith.constant 0 : index
    %c0_1 = arith.constant 0 : index
    %c0_2 = arith.constant 0 : index
    %3 = vector.load %arg5[%c0, %c0_1, %c0_2] : memref<1x16x128xf32, #tpu.memory_space<vmem>>, vector<1x16x128xf32>
    %4 = vector.shape_cast %3 : vector<1x16x128xf32> to vector<16x128xf32>
    %c0_3 = arith.constant 0 : index
    %c0_4 = arith.constant 0 : index
    %5 = vector.load %arg3[%c0_3, %c0_4] : memref<16x768xbf16, #tpu.memory_space<vmem>>, vector<16x768xbf16>
    %c0_5 = arith.constant 0 : index
    %c0_6 = arith.constant 0 : index
    %6 = vector.load %arg4[%c0_5, %c0_6] : memref<768x128xbf16, #tpu.memory_space<vmem>>, vector<768x128xbf16>
    %cst = arith.constant dense<0.000000e+00> : vector<16x128xf32>
    %7 = tpu.matmul %5, %6, %cst {dimension_numbers = #tpu.dot_dimension_numbers<[1], [0], [0], [1], [0, 0, 1, 1], [], []>} : vector<16x768xbf16>, vector<768x128xbf16>, vector<16x128xf32> -> vector<16x128xf32>
    %8 = arith.addf %4, %7 : vector<16x128xf32>
    %c0_7 = arith.constant 0 : index
    %c0_8 = arith.constant 0 : index
    %c0_9 = arith.constant 0 : index
    %9 = vector.load %arg5[%c0_7, %c0_8, %c0_9] : memref<1x16x128xf32, #tpu.memory_space<vmem>>, vector<1x16x128xf32>
    %10 = vector.shape_cast %9 : vector<1x16x128xf32> to vector<16x128xf32>
    %11 = vector.shape_cast %8 : vector<16x128xf32> to vector<1x16x128xf32>
    tpu.vector_store %arg5[%c0_7, %c0_8, %c0_9], %11 {strides = array<i32>} : memref<1x16x128xf32, #tpu.memory_space<vmem>>, vector<1x16x128xf32>,
    return
  }
  func.func @transform_0(%arg0: i32, %arg1: i32, %arg2: i32) -> (i32, i32) {
    %c1_i32 = arith.constant 1 : i32
    %0 = arith.muli %arg0, %c1_i32 : i32
    %1 = arith.addi %0, %arg2 : i32
    %c0_i32 = arith.constant 0 : i32
    return %arg1, %1 : i32, i32
  }
  func.func @transform_1(%arg0: i32, %arg1: i32, %arg2: i32) -> (i32, i32) {
    %c1_i32 = arith.constant 1 : i32
    %0 = arith.muli %arg0, %c1_i32 : i32
    %1 = arith.addi %0, %arg2 : i32
    %c0_i32 = arith.constant 0 : i32
    %c0_i32_0 = arith.constant 0 : i32
    return %1, %c0_i32 : i32, i32
  }
  func.func @transform_2(%arg0: i32, %arg1: i32, %arg2: i32) -> (i32, i32, i32) {
    %c0_i32 = arith.constant 0 : i32
    %c0_i32_0 = arith.constant 0 : i32
    return %arg0, %arg1, %c0_i32 : i32, i32, i32
  }
}

</mosaic_0001>

<bundles_post_ra>
// kernel: tpu_custom_call.1
= control target key start
LH: loop header
LB: loop body
LE: loop exit
PB: predicated region body
PF: predicated region fallthrough
CT: control target
= control target key end

     0   :  { %7 = vsyncpa [#allocation3], 0  ;;  %s983_s0 = inlined_call_operand.hbm [shape: bf16[16,768], index: 0, kind: input, shape index: {}]   ;;  %s984_s1 = inlined_call_operand.hbm [shape: bf16[768,128], index: 1, kind: input, shape index: {}]   ;;  %s985_s2 = inlined_call_operand.hbm [shape: f32[1,16,128], index: 2, kind: output, shape index: {}]  }
   0x1   :  { %8 = vsyncpa [#allocation6], 0 }
   0x2   :  { %9 = vsyncpa [#allocation4], 0  ;;  %s18_s11 = sshll.u32 %s983_s0, 4  ;;  %s950_s12 = smov [#allocation2]   ;;  %s19_s11 = int_to_ptr.hbm [resolvable:$true] %s18_s11 }
   0x3   :  { %s20_s13 = sshll.u32 %s950_s12, 4  ;;  %s35_s16 = sshll.u32 %s984_s1, 4  ;;  %s21_s13 = int_to_ptr.vmem [resolvable:$true] %s20_s13  ;;  %s36_s16 = int_to_ptr.hbm [resolvable:$true] %s35_s16 }
   0x4   :  { %s951_s17 = smov 384   ;;  %s952_s18 = smov 24  }
   0x5   :  { %26 = dma.hbm_to_vmem [thread:$0]  %s19_s11, 768, %s21_s13, [#allocation3], %s951_s17, %s951_s17, %s952_s18  }
   0x6   :  { %s953_s19 = smov [#allocation5]   ;;  %s954_s21 = smov 64  }
   0x7   :  { %s37_s20 = sshll.u32 %s953_s19, 4  ;;  %s955_s22 = smov 4   ;;  %s38_s20 = int_to_ptr.vmem [resolvable:$true] %s37_s20 }
   0x8   :  { %43 = dma.hbm_to_vmem [thread:$0]  %s36_s16, 6144, %s38_s20, [#allocation6], %s954_s21, %s954_s21, %s955_s22  }
   0x9   :  { %944 = dma.done.wait [#allocation3], 768  }
   0xa   :  { %945 = vsyncadd [#allocation3], 4294966528 }
   0xb   :  { %946 = dma.done.wait [#allocation6], 6144  }
   0xc   :  { %947 = vsyncadd [#allocation6], 4294961152  ;;  %v821_v0 = vld [vmem:[#allocation5 + $0x38] sm:$0xff]  ;;  %v820_v4 = vld [vmem:[#allocation5 + $0x30] sm:$0xff]  ;;  %s956_s0 = smov [#allocation7]   ;;  %s578_s25 = sshll.u32 %s985_s2, 4  ;;  %s579_s25 = int_to_ptr.hbm [resolvable:$true] %s578_s25 }
   0xd   :  { %v829_v1 = vld [vmem:[#allocation5 + $0x78] sm:$0xff]  ;;  %484 = vmatpush.bf16.msra.mxu0 %v821_v0  ;;  %v828_v5 = vld [vmem:[#allocation5 + $0x70] sm:$0xff]  ;;  %v819_v8 = vld [vmem:[#allocation5 + $0x28] sm:$0xff]  ;;  %s576_s1 = sshll.u32 %s956_s0, 4  ;;  %s957_s26 = smov 128   ;;  %s577_s1 = int_to_ptr.vmem [resolvable:$true] %s576_s1 }
   0xe   :  { %v837_v2 = vld [vmem:[#allocation5 + $0xb8] sm:$0xff]  ;;  %498 = vmatpush.bf16.msra.mxu1 %v829_v1  ;;  %v836_v6 = vld [vmem:[#allocation5 + $0xb0] sm:$0xff]  ;;  %v827_v9 = vld [vmem:[#allocation5 + $0x68] sm:$0xff]  ;;  %s958_s27 = smov 8  }
   0xf   :  { %v845_v3 = vld [vmem:[#allocation5 + $0xf8] sm:$0xff]  ;;  %512 = vmatpush.bf16.msra.mxu2 %v837_v2  ;;  %v844_v7 = vld [vmem:[#allocation5 + $0xf0] sm:$0xff]  ;;  %v835_v10 = vld [vmem:[#allocation5 + $0xa8] sm:$0xff] }
  0x10   :  { %526 = vmatpush.bf16.msra.mxu3 %v845_v3  ;;  %v843_v11 = vld [vmem:[#allocation5 + $0xe8] sm:$0xff]  ;;  %v818_v12 = vld [vmem:[#allocation5 + $0x20] sm:$0xff]  ;;  %v817_v16 = vld [vmem:[#allocation5 + $0x18] sm:$0xff] }
  0x11   :  { %485 = vmatpush.bf16.msra.mxu0 %v820_v4  ;;  %v826_v13 = vld [vmem:[#allocation5 + $0x60] sm:$0xff]  ;;  %v825_v17 = vld [vmem:[#allocation5 + $0x58] sm:$0xff]  ;;  %v816_v20 = vld [vmem:[#allocation5 + $0x10] sm:$0xff] }
  0x12   :  { %499 = vmatpush.bf16.msra.mxu1 %v828_v5  ;;  %v834_v14 = vld [vmem:[#allocation5 + $0xa0] sm:$0xff]  ;;  %v833_v18 = vld [vmem:[#allocation5 + $0x98] sm:$0xff]  ;;  %v824_v21 = vld [vmem:[#allocation5 + $0x50] sm:$0xff] }
  0x13   :  { %513 = vmatpush.bf16.msra.mxu2 %v836_v6  ;;  %v842_v15 = vld [vmem:[#allocation5 + $0xe0] sm:$0xff]  ;;  %v841_v19 = vld [vmem:[#allocation5 + $0xd8] sm:$0xff]  ;;  %v832_v22 = vld [vmem:[#allocation5 + $0x90] sm:$0xff] }
  0x14   :  { %527 = vmatpush.bf16.msra.mxu3 %v844_v7  ;;  %v840_v23 = vld [vmem:[#allocation5 + $0xd0] sm:$0xff]  ;;  %v815_v24 = vld [vmem:[#allocation5 + $0x8] sm:$0xff]  ;;  %v814_v28 = vld [vmem:[#allocation5] sm:$0xff] }
  0x15   :  { %486 = vmatpush.bf16.msra.mxu0 %v819_v8  ;;  %v823_v25 = vld [vmem:[#allocation5 + $0x48] sm:$0xff]  ;;  %v822_v29 = vld [vmem:[#allocation5 + $0x40] sm:$0xff]  ;;  %v853_v31 = vld [vmem:[#allocation5 + $0x138] sm:$0xff] }
  0x16   :  { %500 = vmatpush.bf16.msra.mxu1 %v827_v9  ;;  %v831_v26 = vld [vmem:[#allocation5 + $0x88] sm:$0xff]  ;;  %v830_v30 = vld [vmem:[#allocation5 + $0x80] sm:$0xff]  ;;  %v594_v32 = vld [vmem:[#allocation2] sm:$0xf] }
  0x17   :  { %514 = vmatpush.bf16.msra.mxu2 %v835_v10  ;;  %v839_v27 = vld [vmem:[#allocation5 + $0xc8] sm:$0xff]  ;;  %v808_v34 = vld [vmem:[#allocation2 + $0x4] sm:$0xf]  ;;  %v861_v36 = vld [vmem:[#allocation5 + $0x178] sm:$0xff] }
  0x18   :  { %528 = vmatpush.bf16.msra.mxu3 %v843_v11  ;;  %v811_v33 = vld [vmem:[#allocation2 + $0x14] sm:$0xf0]  ;;  %v596_v35 = vld [vmem:[#allocation2 + $0x18] sm:$0xf0]  ;;  %v602_v37 = vld [vmem:[#allocation2 + $0x8] sm:$0xf] }
  0x19   :  { %487 = vmatpush.bf16.msra.mxu0 %v818_v12  ;;  %v812_v38 = vld [vmem:[#allocation2 + $0x1c] sm:$0xf0]  ;;  %v838_v39 = vld [vmem:[#allocation5 + $0xc0] sm:$0xff]  ;;  %v809_v40 = vld [vmem:[#allocation2 + $0xc] sm:$0xf]  ;;  %v595_v42 = vor.u32 %v811_v33, %v594_v32  ;;  %v599_v43 = vor.u32 %v808_v34, %v596_v35 }
  0x1a   :  { %501 = vmatpush.bf16.msra.mxu1 %v826_v13  ;;  %v604_v41 = vld [vmem:[#allocation2 + $0x20] sm:$0xf0]  ;;  %v603_v44 = vor.u32 %v812_v38, %v602_v37  ;;  %v851_v48 = vld [vmem:[#allocation5 + $0x128] sm:$0xff]  ;;  %v850_v50 = vld [vmem:[#allocation5 + $0x120] sm:$0xff] }
  0x1b   :  { %515 = vmatpush.bf16.msra.mxu2 %v834_v14  ;;  %v852_v45 = vld [vmem:[#allocation5 + $0x130] sm:$0xff]  ;;  %v607_v46 = vor.u32 %v809_v40, %v604_v41  ;;  %v859_v49 = vld [vmem:[#allocation5 + $0x168] sm:$0xff]  ;;  %v858_v51 = vld [vmem:[#allocation5 + $0x160] sm:$0xff] }
  0x1c   :  { %529 = vmatpush.bf16.msra.mxu3 %v842_v15  ;;  %v860_v47 = vld [vmem:[#allocation5 + $0x170] sm:$0xff]  ;;  %v849_v52 = vld [vmem:[#allocation5 + $0x118] sm:$0xff]  ;;  %v847_v56 = vld [vmem:[#allocation5 + $0x108] sm:$0xff] }
  0x1d   :  { %488 = vmatpush.bf16.msra.mxu0 %v817_v16  ;;  %v857_v53 = vld [vmem:[#allocation5 + $0x158] sm:$0xff]  ;;  %v848_v54 = vld [vmem:[#allocation5 + $0x110] sm:$0xff]  ;;  %v855_v57 = vld [vmem:[#allocation5 + $0x148] sm:$0xff] }
  0x1e   :  { %502 = vmatpush.bf16.msra.mxu1 %v825_v17  ;;  %v856_v55 = vld [vmem:[#allocation5 + $0x150] sm:$0xff]  ;;  %v846_v58 = vld [vmem:[#allocation5 + $0x100] sm:$0xff]  ;;  %v813_v60 = vld [vmem:[#allocation2 + $0x24] sm:$0xf0] }
  0x1f   :  { %516 = vmatpush.bf16.msra.mxu2 %v833_v18  ;;  %v610_v59 = vld [vmem:[#allocation2 + $0x10] sm:$0xf]  ;;  %v810_v62 = vld [vmem:[#allocation2 + $0x14] sm:$0xf]  ;;  %v612_v63 = vld [vmem:[#allocation2 + $0x28] sm:$0xf0] }
  0x20   :  { %530 = vmatpush.bf16.msra.mxu3 %v841_v19  ;;  %v854_v61 = vld [vmem:[#allocation5 + $0x140] sm:$0xff]  ;;  %v611_v0 = vor.u32 %v813_v60, %v610_v59  ;;  %v615_v1 = vor.u32 %v810_v62, %v612_v63 }
  0x21   :  { %489 = vmatpush.bf16.msra.mxu0 %v816_v20 }
  0x22   :  { %503 = vmatpush.bf16.msra.mxu1 %v824_v21 }
  0x23   :  { %517 = vmatpush.bf16.msra.mxu2 %v832_v22 }
  0x24   :  { %531 = vmatpush.bf16.msra.mxu3 %v840_v23 }
  0x25   :  { %490 = vmatpush.bf16.msra.mxu0 %v815_v24 }
  0x26   :  { %504 = vmatpush.bf16.msra.mxu1 %v823_v25 }
  0x27   :  { %518 = vmatpush.bf16.msra.mxu2 %v831_v26 }
  0x28   :  { %532 = vmatpush.bf16.msra.mxu3 %v839_v27 }
  0x29   :  { %491 = vmatpush.bf16.msra.mxu0 %v814_v28 }
  0x2a   :  { %505 = vmatpush.bf16.msra.mxu1 %v822_v29 }
  0x2b   :  { %519 = vmatpush.bf16.msra.mxu2 %v830_v30 }
  0x2c   :  { %533 = vmatpush.bf16.msra.mxu3 %v838_v39  ;;  %492 = vmatmul.bf16.vlgmr.msra.gmra.mxu0 %v595_v42 }
  0x2d   :  { %540 = vmatpush.bf16.msrb.mxu0 %v853_v31  ;;  %506 = vmatmul.bf16.vlgmr.msra.gmra.mxu1 %v599_v43 }
  0x2e   :  { %554 = vmatpush.bf16.msrb.mxu1 %v861_v36  ;;  %520 = vmatmul.bf16.vlgmr.msra.gmra.mxu2 %v603_v44 }
  0x2f   :  { %534 = vmatmul.bf16.vlgmr.msra.gmra.mxu3 %v607_v46 }
  0x31   :  { %541 = vmatpush.bf16.msrb.mxu0 %v852_v45 }
  0x32   :  { %555 = vmatpush.bf16.msrb.mxu1 %v860_v47 }
  0x35   :  { %542 = vmatpush.bf16.msrb.mxu0 %v851_v48 }
  0x36   :  { %556 = vmatpush.bf16.msrb.mxu1 %v859_v49 }
  0x39   :  { %543 = vmatpush.bf16.msrb.mxu0 %v850_v50 }
  0x3a   :  { %557 = vmatpush.bf16.msrb.mxu1 %v858_v51 }
  0x3d   :  { %544 = vmatpush.bf16.msrb.mxu0 %v849_v52 }
  0x3e   :  { %558 = vmatpush.bf16.msrb.mxu1 %v857_v53 }
  0x41   :  { %545 = vmatpush.bf16.msrb.mxu0 %v848_v54 }
  0x42   :  { %559 = vmatpush.bf16.msrb.mxu1 %v856_v55 }
  0x45   :  { %546 = vmatpush.bf16.msrb.mxu0 %v847_v56 }
  0x46   :  { %560 = vmatpush.bf16.msrb.mxu1 %v855_v57 }
  0x49   :  { %547 = vmatpush.bf16.msrb.mxu0 %v846_v58 }
  0x4a   :  { %561 = vmatpush.bf16.msrb.mxu1 %v854_v61 }
  0x4c   :  { %548 = vmatmul.bf16.vlgmr.msrb.gmra.mxu0 %v611_v0 }
  0x4d   :  { %562 = vmatmul.bf16.vlgmr.msrb.gmra.mxu1 %v615_v1 }
  0xa9   :  { %v493_v2 = vpop.f32.mrf.mxu0 }
  0xaa   :  { %v507_v3 = vpop.f32.mrf.mxu1 }
  0xab   :  { %v508_v5 = vadd.f32 %v507_v3, %v493_v2 }
  0xb1   :  { %v521_v4 = vpop.f32.mrf.mxu2  ;;  %v495_v6 = vpop.f32.mrf.mxu0 }
  0xb2   :  { %v509_v7 = vpop.f32.mrf.mxu1  ;;  %v535_v8 = vpop.f32.mrf.mxu3  ;;  %v522_v9 = vadd.f32 %v521_v4, %v508_v5 }
  0xb3   :  { %v510_v11 = vadd.f32 %v509_v7, %v495_v6 }
  0xb4   :  { %v536_v10 = vadd.f32 %v535_v8, %v522_v9 }
  0xb9   :  { %v523_v12 = vpop.f32.mrf.mxu2 }
  0xba   :  { %v524_v16 = vadd.f32 %v523_v12, %v510_v11  ;;  %v537_v18 = vpop.f32.mrf.mxu3 }
  0xbc   :  { %v538_v19 = vadd.f32 %v537_v18, %v524_v16 }
  0xc9   :  { %v549_v13 = vpop.f32.mrf.mxu0 }
  0xca   :  { %v550_v14 = vadd.f32 %v549_v13, %v536_v10  ;;  %v563_v15 = vpop.f32.mrf.mxu1 }
  0xcc   :  { %v564_v17 = vadd.f32 %v563_v15, %v550_v14 }
  0xce   :  { %570 = vst [vmem:[#allocation7] sm:$0xff] %v564_v17 }
  0xd1   :  { %v551_v20 = vpop.f32.mrf.mxu0 }
  0xd2   :  { %v552_v21 = vadd.f32 %v551_v20, %v538_v19  ;;  %v565_v22 = vpop.f32.mrf.mxu1 }
  0xd4   :  { %v566_v23 = vadd.f32 %v565_v22, %v552_v21 }
  0xd6   :  { %571 = vst [vmem:[#allocation7 + $0x8] sm:$0xff] %v566_v23 }
  0xd7   :  { %584 = dma.vmem_to_hbm [thread:$0]  %s577_s1, 256, %s579_s25, [#allocation4], %s957_s26, %s957_s26, %s958_s27  }
  0xd8   :  { %948 = dma.done.wait [#allocation4], 256  }
  0xd9   :  { %949 = vsyncadd [#allocation4], 4294967040 }
  0xda   :  { %589 = vsyncpa [#allocation3], 1 }
  0xdb   :  { %590 = vsyncpa [#allocation6], 1 }
  0xdc   :  { %591 = vsyncpa [#allocation4], 1 }

</bundles_post_ra>
